<compile_context>
chip_gen: v7x
topology: tpu7x:2x2x1
jax: 0.10.0
libtpu: 0.0.40
codegen_flags: <defaults>
</compile_context>

<pallas_src>
import math

import jax
import jax.numpy as jnp
from jax.experimental import pallas as pl
from jax.experimental.pallas import tpu as pltpu

# ----------------------------- model dims (small) -----------------------------
B = 4           # num_batch (also the GRU scan length)
IN_NC = 16      # channels of raw input (encoder i sees IN_NC - i channels)
OUT_NC = 8      # out_nc
BASE_NF = 8     # base_nf
NUM_INPUT = 3   # number of input streams / attention classes
NUM_RES = 3     # residual blocks
NUM_GRU = 2     # GRUCell hidden size


# ------------------------------ fused forward kernel ---------------------------
def fused_arch_kernel(raw_ref, g1_ref, g2_ref, in2_ref,
                      attn1_ref, attn2_ref,
                      ew0_ref, ew1_ref, ew2_ref, eb_ref,
                      rw_ref, rb_ref,
                      wih_ref, hh_ref,
                      out_ref):
    f32 = jnp.float32
    raw = raw_ref[...]                                                    # (B, IN_NC)

    # ---- AttentionBlock: Conv1d(k=1) -> ReLU -> Flatten -> Linear -> Softmax --
    # attn1 = [W1 (IN_NC, BASE_NF) ; b1 (1, BASE_NF)], attn2 packed likewise.
    h = jnp.dot(raw, attn1_ref[:IN_NC, :], preferred_element_type=f32) + attn1_ref[IN_NC:, :]
    h = jnp.maximum(h, 0.0)                                               # (B, BASE_NF)
    logits = (jnp.dot(h, attn2_ref[:BASE_NF, :], preferred_element_type=f32)
              + attn2_ref[BASE_NF:, :])                                   # (B, NUM_INPUT)
    m = jnp.max(logits, axis=1, keepdims=True)
    e = jnp.exp(logits - m)
    a = e * pl.reciprocal(jnp.sum(e, axis=1, keepdims=True), approx=True)  # (B, NUM_INPUT)

    # ---- SeqInceptionBlock encoders (constant-folded to one matmul each) and
    #      attention mix einsum('bi,bji->bj') as a VPU broadcast sum; the three
    #      effective encoder bias rows are folded in as a @ eb.
    o0 = jnp.dot(raw,         ew0_ref[...], preferred_element_type=f32)
    o1 = jnp.dot(g1_ref[...], ew1_ref[...], preferred_element_type=f32)
    o2 = jnp.dot(g2_ref[...], ew2_ref[...], preferred_element_type=f32)
    y = (a[:, 0:1] * o0 + a[:, 1:2] * o1 + a[:, 2:3] * o2
         + jnp.dot(a, eb_ref[...], preferred_element_type=f32))           # (B, OUT_NC)

    # ---- residual tower (centre taps of the k=3 convs) ------------------------
    # rw/rb interleave [conv1_0, conv2_0, conv1_1, conv2_1, ...].
    for j in range(NUM_RES):
        t = jnp.maximum(
            jnp.dot(y, rw_ref[2 * j], preferred_element_type=f32) + rb_ref[2 * j], 0.0)
        y = y + jnp.dot(t, rw_ref[2 * j + 1], preferred_element_type=f32) + rb_ref[2 * j + 1]

    # ---- GRUCell scan over the batch dim (sequence of B vectors, batch=1) -----
    # gi does not depend on hx: compute all input gates in two stacked matmuls,
    # split over [input2 | y] so no concat is needed.  Gate order: (r, z, n).
    H = NUM_GRU
    hh = hh_ref[...]                                                      # (2 + H, 3H)
    gi_all = (jnp.dot(in2_ref[...], wih_ref[:OUT_NC, :], preferred_element_type=f32)
              + jnp.dot(y, wih_ref[OUT_NC:, :], preferred_element_type=f32)
              + hh[0:1, :])                                               # + b_ih, (B, 3H)
    bhh = hh[1:2, :]                                                      # (1, 3H)
    whh = hh[2:2 + H, :]                                                  # (H, 3H)

    hx = jnp.zeros((1, H), f32)                                           # initial hidden = 0
    for t in range(B):                                                    # fully unrolled
        gi = gi_all[t:t + 1, :]                                           # (1, 3H)
        gh = bhh                                                          # h2h gates on the VPU
        for k in range(H):
            gh = gh + hx[:, k:k + 1] * whh[k:k + 1, :]                    # (1, 3H)
        r = jax.nn.sigmoid(gi[:, 0:H]     + gh[:, 0:H])
        z = jax.nn.sigmoid(gi[:, H:2 * H] + gh[:, H:2 * H])
        n = jnp.tanh(gi[:, 2 * H:3 * H] + r * gh[:, 2 * H:3 * H])
        hx = (1.0 - z) * n + z * hx

    out_ref[...] = jax.nn.sigmoid(hx)                                     # (1, H)


# ------------------------------ parameter init ---------------------------------
def _uniform(key, shape, fan_in):
    bound = 1.0 / math.sqrt(fan_in)
    return jax.random.uniform(key, shape, jnp.float32, -bound, bound)


def init_params(key):
    # residual weight packing below interleaves (OUT_NC, BASE_NF) and
    # (BASE_NF, OUT_NC) blocks into one stack -> requires square blocks.
    assert OUT_NC == BASE_NF
    keys = iter(jax.random.split(key, 64))
    p = {}

    # AttentionBlock: Conv1d(IN_NC, BASE_NF, k=1) ; Linear(BASE_NF, NUM_INPUT).
    # Bias row appended under each weight matrix (one operand each).
    w1 = jnp.transpose(_uniform(next(keys), (BASE_NF, IN_NC, 1), IN_NC)[:, :, 0])   # (IN_NC, BASE_NF)
    b1 = _uniform(next(keys), (1, BASE_NF), IN_NC)
    w2 = jnp.transpose(_uniform(next(keys), (NUM_INPUT, BASE_NF), BASE_NF))         # (BASE_NF, NUM_INPUT)
    b2 = _uniform(next(keys), (1, NUM_INPUT), BASE_NF)
    p["attn1"] = jnp.concatenate([w1, b1], axis=0)                                  # (IN_NC+1, BASE_NF)
    p["attn2"] = jnp.concatenate([w2, b2], axis=0)                                  # (BASE_NF+1, NUM_INPUT)

    # Encoders: SeqInceptionBlock(IN_NC - i, OUT_NC).  With L == 1 only centre
    # taps matter and the block is linear, so fold the three convs + 1x1 pool
    # into a single effective (Ci, OUT_NC) matmul + bias row at init time.
    enc_w, enc_b = [], []
    for i in range(NUM_INPUT):
        ci = IN_NC - i
        w1c = jnp.transpose(_uniform(next(keys), (OUT_NC, ci, 1), ci)[:, :, 0])
        b1c = _uniform(next(keys), (1, OUT_NC), ci)
        w3c = jnp.transpose(_uniform(next(keys), (OUT_NC, ci, 3), ci * 3)[:, :, 1])
        b3c = _uniform(next(keys), (1, OUT_NC), ci * 3)
        w5c = jnp.transpose(_uniform(next(keys), (OUT_NC, ci, 5), ci * 5)[:, :, 2])
        b5c = _uniform(next(keys), (1, OUT_NC), ci * 5)
        wp = jnp.transpose(_uniform(next(keys), (OUT_NC, OUT_NC * 3, 1), OUT_NC * 3)[:, :, 0])
        bp = _uniform(next(keys), (1, OUT_NC), OUT_NC * 3)
        wp1, wp3, wp5 = wp[:OUT_NC], wp[OUT_NC:2 * OUT_NC], wp[2 * OUT_NC:]
        enc_w.append(w1c @ wp1 + w3c @ wp3 + w5c @ wp5)                             # (ci, OUT_NC)
        enc_b.append(b1c @ wp1 + b3c @ wp3 + b5c @ wp5 + bp)                        # (1, OUT_NC)
    p["enc_w"] = enc_w
    p["enc_b"] = jnp.concatenate(enc_b, axis=0)                                     # (NUM_INPUT, OUT_NC)

    # Residual blocks: conv1 (BASE_NF, OUT_NC, 3), conv2 (OUT_NC, BASE_NF, 3);
    # centre-tap weights / biases interleaved [conv1_j, conv2_j, ...].
    rws, rbs = [], []
    for _ in range(NUM_RES):
        c1 = _uniform(next(keys), (BASE_NF, OUT_NC, 3), OUT_NC * 3)
        c2 = _uniform(next(keys), (OUT_NC, BASE_NF, 3), BASE_NF * 3)
        rws.append(jnp.transpose(c1[:, :, 1]))                                      # (OUT_NC, BASE_NF)
        rbs.append(_uniform(next(keys), (1, BASE_NF), OUT_NC * 3))
        rws.append(jnp.transpose(c2[:, :, 1]))                                      # (BASE_NF, OUT_NC)
        rbs.append(_uniform(next(keys), (1, OUT_NC), BASE_NF * 3))
    p["res_w"] = jnp.stack(rws)                                                     # (2*NUM_RES, 8, 8)
    p["res_b"] = jnp.stack(rbs)                                                     # (2*NUM_RES, 1, 8)

    # GRUCell(2*OUT_NC, NUM_GRU): gates (r, z, n) stacked along the last axis.
    gin = 2 * OUT_NC
    wih_g = [jnp.transpose(_uniform(next(keys), (NUM_GRU, gin), NUM_GRU)) for _ in range(3)]
    whh_g = [jnp.transpose(_uniform(next(keys), (NUM_GRU, NUM_GRU), NUM_GRU)) for _ in range(3)]
    bih_g = [_uniform(next(keys), (1, NUM_GRU), NUM_GRU) for _ in range(3)]
    bhh_g = [_uniform(next(keys), (1, NUM_GRU), NUM_GRU) for _ in range(3)]
    p["gru_wih"] = jnp.concatenate(wih_g, axis=1)                                   # (2*OUT_NC, 3H)
    p["gru_hh"] = jnp.concatenate(
        [jnp.concatenate(bih_g, axis=1),                                            # row 0: b_ih
         jnp.concatenate(bhh_g, axis=1),                                            # row 1: b_hh
         jnp.concatenate(whh_g, axis=1)], axis=0)                                   # rows 2..: W_hh
    return p


# --------------------------------- forward -------------------------------------
def arch_forward(inputs_list, input2, p):
    raw2d = inputs_list[0][:, :, 0]                                       # (B, IN_NC)
    g1_2d = inputs_list[1][:, :, 0]                                       # (B, IN_NC-1)
    g2_2d = inputs_list[2][:, :, 0]                                       # (B, IN_NC-2)
    in2_2d = input2[:, :, 0]                                              # (B, OUT_NC)

    args = (raw2d, g1_2d, g2_2d, in2_2d,
            p["attn1"], p["attn2"],
            p["enc_w"][0], p["enc_w"][1], p["enc_w"][2], p["enc_b"],
            p["res_w"], p["res_b"],
            p["gru_wih"], p["gru_hh"])

    return pl.pallas_call(
        fused_arch_kernel,
        out_shape=jax.ShapeDtypeStruct((1, NUM_GRU), jnp.float32),
        in_specs=[pl.BlockSpec(memory_space=pltpu.MemorySpace.VMEM)] * len(args),
        out_specs=pl.BlockSpec(memory_space=pltpu.MemorySpace.VMEM),
    )(*args)                                                              # (1, NUM_GRU)


arch_forward_jit = jax.jit(arch_forward)


# ----------------------------------- main ---------------------------------------
if __name__ == "__main__":
    key = jax.random.PRNGKey(0)
    k_raw, k_g1, k_g2, k_pre, k_param = jax.random.split(key, 5)

    # PyTorch-analogous inputs: NCL with L == 1
    raw = jax.random.normal(k_raw, (B, IN_NC, 1), jnp.float32)
    grad1 = jax.random.normal(k_g1, (B, IN_NC - 1, 1), jnp.float32)
    grad2 = jax.random.normal(k_g2, (B, IN_NC - 2, 1), jnp.float32)
    input2 = jax.random.normal(k_pre, (B, OUT_NC, 1), jnp.float32)        # "pretrained"

    params = init_params(k_param)

    out = arch_forward_jit([raw, grad1, grad2], input2, params)
    out = jax.block_until_ready(out)
    assert out.shape == (1, NUM_GRU)
    assert bool(jnp.all(jnp.isfinite(out)))
    assert bool(jnp.all((out > 0.0) & (out < 1.0)))                       # sigmoid range
    print("KERNEL_OK")
</pallas_src>

<mosaic_0001>
module attributes {stable_mosaic.version = 11 : i64} {
  func.func @fused_arch_kernel(%arg0: memref<4x16xf32, #tpu.memory_space<vmem>>, %arg1: memref<4x15xf32, #tpu.memory_space<vmem>>, %arg2: memref<4x14xf32, #tpu.memory_space<vmem>>, %arg3: memref<4x8xf32, #tpu.memory_space<vmem>>, %arg4: memref<17x8xf32, #tpu.memory_space<vmem>>, %arg5: memref<9x3xf32, #tpu.memory_space<vmem>>, %arg6: memref<16x8xf32, #tpu.memory_space<vmem>>, %arg7: memref<15x8xf32, #tpu.memory_space<vmem>>, %arg8: memref<14x8xf32, #tpu.memory_space<vmem>>, %arg9: memref<3x8xf32, #tpu.memory_space<vmem>>, %arg10: memref<6x8x8xf32, #tpu.memory_space<vmem>>, %arg11: memref<6x1x8xf32, #tpu.memory_space<vmem>>, %arg12: memref<16x6xf32, #tpu.memory_space<vmem>>, %arg13: memref<4x6xf32, #tpu.memory_space<vmem>>, %arg14: memref<1x2xf32, #tpu.memory_space<vmem>>) attributes {dimension_semantics = [], scalar_prefetch = 0 : i64, scratch_operands = 0 : i64, tpu.core_type = #tpu.core_type<tc>} {
    %c0 = arith.constant 0 : index
    %c0_0 = arith.constant 0 : index
    %0 = vector.load %arg0[%c0, %c0_0] : memref<4x16xf32, #tpu.memory_space<vmem>>, vector<4x16xf32>
    %c0_1 = arith.constant 0 : index
    %c0_2 = arith.constant 0 : index
    %1 = vector.load %arg4[%c0_1, %c0_2] : memref<17x8xf32, #tpu.memory_space<vmem>>, vector<16x8xf32>
    %cst = arith.constant dense<0.000000e+00> : vector<4x8xf32>
    %2 = tpu.matmul %0, %1, %cst {dimension_numbers = #tpu.dot_dimension_numbers<[1], [0], [0], [1], [0, 0, 1, 1], [], []>} : vector<4x16xf32>, vector<16x8xf32>, vector<4x8xf32> -> vector<4x8xf32>
    %c16 = arith.constant 16 : index
    %c0_3 = arith.constant 0 : index
    %3 = vector.load %arg4[%c16, %c0_3] : memref<17x8xf32, #tpu.memory_space<vmem>>, vector<1x8xf32>
    %4 = vector.broadcast %3 : vector<1x8xf32> to vector<4x8xf32>
    %5 = arith.addf %2, %4 : vector<4x8xf32>
    %cst_4 = arith.constant 0.000000e+00 : f32
    %6 = vector.broadcast %cst_4 : f32 to vector<4x8xf32>
    %7 = arith.maximumf %5, %6 : vector<4x8xf32>
    %c0_5 = arith.constant 0 : index
    %c0_6 = arith.constant 0 : index
    %8 = vector.load %arg5[%c0_5, %c0_6] : memref<9x3xf32, #tpu.memory_space<vmem>>, vector<8x3xf32>
    %cst_7 = arith.constant dense<0.000000e+00> : vector<4x3xf32>
    %9 = tpu.matmul %7, %8, %cst_7 {dimension_numbers = #tpu.dot_dimension_numbers<[1], [0], [0], [1], [0, 0, 1, 1], [], []>} : vector<4x8xf32>, vector<8x3xf32>, vector<4x3xf32> -> vector<4x3xf32>
    %c8 = arith.constant 8 : index
    %c0_8 = arith.constant 0 : index
    %10 = vector.load %arg5[%c8, %c0_8] : memref<9x3xf32, #tpu.memory_space<vmem>>, vector<1x3xf32>
    %11 = vector.broadcast %10 : vector<1x3xf32> to vector<4x3xf32>
    %12 = arith.addf %9, %11 : vector<4x3xf32>
    %cst_9 = arith.constant dense<0xFF800000> : vector<4xf32>
    %13 = vector.multi_reduction <maximumf>, %12, %cst_9 [1] : vector<4x3xf32> to vector<4xf32>
    %14 = vector.shape_cast %13 : vector<4xf32> to vector<4x1xf32>
    %15 = vector.broadcast %14 : vector<4x1xf32> to vector<4x3xf32>
    %16 = arith.subf %12, %15 : vector<4x3xf32>
    %17 = math.exp %16 : vector<4x3xf32>
    %cst_10 = arith.constant dense<0.000000e+00> : vector<4xf32>
    %18 = vector.multi_reduction <add>, %17, %cst_10 [1] : vector<4x3xf32> to vector<4xf32>
    %19 = vector.shape_cast %18 : vector<4xf32> to vector<4x1xf32>
    %20 = tpu.reciprocal %19 {approx = true} : vector<4x1xf32> -> vector<4x1xf32>
    %21 = vector.broadcast %20 : vector<4x1xf32> to vector<4x3xf32>
    %22 = arith.mulf %17, %21 : vector<4x3xf32>
    %c0_11 = arith.constant 0 : index
    %c0_12 = arith.constant 0 : index
    %23 = vector.load %arg6[%c0_11, %c0_12] : memref<16x8xf32, #tpu.memory_space<vmem>>, vector<16x8xf32>
    %cst_13 = arith.constant dense<0.000000e+00> : vector<4x8xf32>
    %24 = tpu.matmul %0, %23, %cst_13 {dimension_numbers = #tpu.dot_dimension_numbers<[1], [0], [0], [1], [0, 0, 1, 1], [], []>} : vector<4x16xf32>, vector<16x8xf32>, vector<4x8xf32> -> vector<4x8xf32>
    %c0_14 = arith.constant 0 : index
    %c0_15 = arith.constant 0 : index
    %25 = vector.load %arg1[%c0_14, %c0_15] : memref<4x15xf32, #tpu.memory_space<vmem>>, vector<4x15xf32>
    %c0_16 = arith.constant 0 : index
    %c0_17 = arith.constant 0 : index
    %26 = vector.load %arg7[%c0_16, %c0_17] : memref<15x8xf32, #tpu.memory_space<vmem>>, vector<15x8xf32>
    %cst_18 = arith.constant dense<0.000000e+00> : vector<4x8xf32>
    %27 = tpu.matmul %25, %26, %cst_18 {dimension_numbers = #tpu.dot_dimension_numbers<[1], [0], [0], [1], [0, 0, 1, 1], [], []>} : vector<4x15xf32>, vector<15x8xf32>, vector<4x8xf32> -> vector<4x8xf32>
    %c0_19 = arith.constant 0 : index
    %c0_20 = arith.constant 0 : index
    %28 = vector.load %arg2[%c0_19, %c0_20] : memref<4x14xf32, #tpu.memory_space<vmem>>, vector<4x14xf32>
    %c0_21 = arith.constant 0 : index
    %c0_22 = arith.constant 0 : index
    %29 = vector.load %arg8[%c0_21, %c0_22] : memref<14x8xf32, #tpu.memory_space<vmem>>, vector<14x8xf32>
    %cst_23 = arith.constant dense<0.000000e+00> : vector<4x8xf32>
    %30 = tpu.matmul %28, %29, %cst_23 {dimension_numbers = #tpu.dot_dimension_numbers<[1], [0], [0], [1], [0, 0, 1, 1], [], []>} : vector<4x14xf32>, vector<14x8xf32>, vector<4x8xf32> -> vector<4x8xf32>
    %31 = vector.extract_strided_slice %22 {offsets = [0, 0], sizes = [4, 1], strides = [1, 1]} : vector<4x3xf32> to vector<4x1xf32>
    %32 = vector.broadcast %31 : vector<4x1xf32> to vector<4x8xf32>
    %33 = arith.mulf %32, %24 : vector<4x8xf32>
    %34 = vector.extract_strided_slice %22 {offsets = [0, 1], sizes = [4, 1], strides = [1, 1]} : vector<4x3xf32> to vector<4x1xf32>
    %35 = vector.broadcast %34 : vector<4x1xf32> to vector<4x8xf32>
    %36 = arith.mulf %35, %27 : vector<4x8xf32>
    %37 = arith.addf %33, %36 : vector<4x8xf32>
    %38 = vector.extract_strided_slice %22 {offsets = [0, 2], sizes = [4, 1], strides = [1, 1]} : vector<4x3xf32> to vector<4x1xf32>
    %39 = vector.broadcast %38 : vector<4x1xf32> to vector<4x8xf32>
    %40 = arith.mulf %39, %30 : vector<4x8xf32>
    %41 = arith.addf %37, %40 : vector<4x8xf32>
    %c0_24 = arith.constant 0 : index
    %c0_25 = arith.constant 0 : index
    %42 = vector.load %arg9[%c0_24, %c0_25] : memref<3x8xf32, #tpu.memory_space<vmem>>, vector<3x8xf32>
    %cst_26 = arith.constant dense<0.000000e+00> : vector<4x8xf32>
    %43 = tpu.matmul %22, %42, %cst_26 {dimension_numbers = #tpu.dot_dimension_numbers<[1], [0], [0], [1], [0, 0, 1, 1], [], []>} : vector<4x3xf32>, vector<3x8xf32>, vector<4x8xf32> -> vector<4x8xf32>
    %44 = arith.addf %41, %43 : vector<4x8xf32>
    %c0_27 = arith.constant 0 : index
    %c0_28 = arith.constant 0 : index
    %c0_29 = arith.constant 0 : index
    %45 = vector.load %arg10[%c0_27, %c0_28, %c0_29] : memref<6x8x8xf32, #tpu.memory_space<vmem>>, vector<1x8x8xf32>
    %46 = vector.shape_cast %45 : vector<1x8x8xf32> to vector<8x8xf32>
    %cst_30 = arith.constant dense<0.000000e+00> : vector<4x8xf32>
    %47 = tpu.matmul %44, %46, %cst_30 {dimension_numbers = #tpu.dot_dimension_numbers<[1], [0], [0], [1], [0, 0, 1, 1], [], []>} : vector<4x8xf32>, vector<8x8xf32>, vector<4x8xf32> -> vector<4x8xf32>
    %c0_31 = arith.constant 0 : index
    %c0_32 = arith.constant 0 : index
    %c0_33 = arith.constant 0 : index
    %48 = vector.load %arg11[%c0_31, %c0_32, %c0_33] : memref<6x1x8xf32, #tpu.memory_space<vmem>>, vector<1x1x8xf32>
    %49 = vector.shape_cast %48 : vector<1x1x8xf32> to vector<1x8xf32>
    %50 = vector.broadcast %49 : vector<1x8xf32> to vector<4x8xf32>
    %51 = arith.addf %47, %50 : vector<4x8xf32>
    %cst_34 = arith.constant 0.000000e+00 : f32
    %52 = vector.broadcast %cst_34 : f32 to vector<4x8xf32>
    %53 = arith.maximumf %51, %52 : vector<4x8xf32>
    %c1 = arith.constant 1 : index
    %c0_35 = arith.constant 0 : index
    %c0_36 = arith.constant 0 : index
    %54 = vector.load %arg10[%c1, %c0_35, %c0_36] : memref<6x8x8xf32, #tpu.memory_space<vmem>>, vector<1x8x8xf32>
    %55 = vector.shape_cast %54 : vector<1x8x8xf32> to vector<8x8xf32>
    %cst_37 = arith.constant dense<0.000000e+00> : vector<4x8xf32>
    %56 = tpu.matmul %53, %55, %cst_37 {dimension_numbers = #tpu.dot_dimension_numbers<[1], [0], [0], [1], [0, 0, 1, 1], [], []>} : vector<4x8xf32>, vector<8x8xf32>, vector<4x8xf32> -> vector<4x8xf32>
    %57 = arith.addf %44, %56 : vector<4x8xf32>
    %c1_38 = arith.constant 1 : index
    %c0_39 = arith.constant 0 : index
    %c0_40 = arith.constant 0 : index
    %58 = vector.load %arg11[%c1_38, %c0_39, %c0_40] : memref<6x1x8xf32, #tpu.memory_space<vmem>>, vector<1x1x8xf32>
    %59 = vector.shape_cast %58 : vector<1x1x8xf32> to vector<1x8xf32>
    %60 = vector.broadcast %59 : vector<1x8xf32> to vector<4x8xf32>
    %61 = arith.addf %57, %60 : vector<4x8xf32>
    %c2 = arith.constant 2 : index
    %c0_41 = arith.constant 0 : index
    %c0_42 = arith.constant 0 : index
    %62 = vector.load %arg10[%c2, %c0_41, %c0_42] : memref<6x8x8xf32, #tpu.memory_space<vmem>>, vector<1x8x8xf32>
    %63 = vector.shape_cast %62 : vector<1x8x8xf32> to vector<8x8xf32>
    %cst_43 = arith.constant dense<0.000000e+00> : vector<4x8xf32>
    %64 = tpu.matmul %61, %63, %cst_43 {dimension_numbers = #tpu.dot_dimension_numbers<[1], [0], [0], [1], [0, 0, 1, 1], [], []>} : vector<4x8xf32>, vector<8x8xf32>, vector<4x8xf32> -> vector<4x8xf32>
    %c2_44 = arith.constant 2 : index
    %c0_45 = arith.constant 0 : index
    %c0_46 = arith.constant 0 : index
    %65 = vector.load %arg11[%c2_44, %c0_45, %c0_46] : memref<6x1x8xf32, #tpu.memory_space<vmem>>, vector<1x1x8xf32>
    %66 = vector.shape_cast %65 : vector<1x1x8xf32> to vector<1x8xf32>
    %67 = vector.broadcast %66 : vector<1x8xf32> to vector<4x8xf32>
    %68 = arith.addf %64, %67 : vector<4x8xf32>
    %cst_47 = arith.constant 0.000000e+00 : f32
    %69 = vector.broadcast %cst_47 : f32 to vector<4x8xf32>
    %70 = arith.maximumf %68, %69 : vector<4x8xf32>
    %c3 = arith.constant 3 : index
    %c0_48 = arith.constant 0 : index
    %c0_49 = arith.constant 0 : index
    %71 = vector.load %arg10[%c3, %c0_48, %c0_49] : memref<6x8x8xf32, #tpu.memory_space<vmem>>, vector<1x8x8xf32>
    %72 = vector.shape_cast %71 : vector<1x8x8xf32> to vector<8x8xf32>
    %cst_50 = arith.constant dense<0.000000e+00> : vector<4x8xf32>
    %73 = tpu.matmul %70, %72, %cst_50 {dimension_numbers = #tpu.dot_dimension_numbers<[1], [0], [0], [1], [0, 0, 1, 1], [], []>} : vector<4x8xf32>, vector<8x8xf32>, vector<4x8xf32> -> vector<4x8xf32>
    %74 = arith.addf %61, %73 : vector<4x8xf32>
    %c3_51 = arith.constant 3 : index
    %c0_52 = arith.constant 0 : index
    %c0_53 = arith.constant 0 : index
    %75 = vector.load %arg11[%c3_51, %c0_52, %c0_53] : memref<6x1x8xf32, #tpu.memory_space<vmem>>, vector<1x1x8xf32>
    %76 = vector.shape_cast %75 : vector<1x1x8xf32> to vector<1x8xf32>
    %77 = vector.broadcast %76 : vector<1x8xf32> to vector<4x8xf32>
    %78 = arith.addf %74, %77 : vector<4x8xf32>
    %c4 = arith.constant 4 : index
    %c0_54 = arith.constant 0 : index
    %c0_55 = arith.constant 0 : index
    %79 = vector.load %arg10[%c4, %c0_54, %c0_55] : memref<6x8x8xf32, #tpu.memory_space<vmem>>, vector<1x8x8xf32>
    %80 = vector.shape_cast %79 : vector<1x8x8xf32> to vector<8x8xf32>
    %cst_56 = arith.constant dense<0.000000e+00> : vector<4x8xf32>
    %81 = tpu.matmul %78, %80, %cst_56 {dimension_numbers = #tpu.dot_dimension_numbers<[1], [0], [0], [1], [0, 0, 1, 1], [], []>} : vector<4x8xf32>, vector<8x8xf32>, vector<4x8xf32> -> vector<4x8xf32>
    %c4_57 = arith.constant 4 : index
    %c0_58 = arith.constant 0 : index
    %c0_59 = arith.constant 0 : index
    %82 = vector.load %arg11[%c4_57, %c0_58, %c0_59] : memref<6x1x8xf32, #tpu.memory_space<vmem>>, vector<1x1x8xf32>
    %83 = vector.shape_cast %82 : vector<1x1x8xf32> to vector<1x8xf32>
    %84 = vector.broadcast %83 : vector<1x8xf32> to vector<4x8xf32>
    %85 = arith.addf %81, %84 : vector<4x8xf32>
    %cst_60 = arith.constant 0.000000e+00 : f32
    %86 = vector.broadcast %cst_60 : f32 to vector<4x8xf32>
    %87 = arith.maximumf %85, %86 : vector<4x8xf32>
    %c5 = arith.constant 5 : index
    %c0_61 = arith.constant 0 : index
    %c0_62 = arith.constant 0 : index
    %88 = vector.load %arg10[%c5, %c0_61, %c0_62] : memref<6x8x8xf32, #tpu.memory_space<vmem>>, vector<1x8x8xf32>
    %89 = vector.shape_cast %88 : vector<1x8x8xf32> to vector<8x8xf32>
    %cst_63 = arith.constant dense<0.000000e+00> : vector<4x8xf32>
    %90 = tpu.matmul %87, %89, %cst_63 {dimension_numbers = #tpu.dot_dimension_numbers<[1], [0], [0], [1], [0, 0, 1, 1], [], []>} : vector<4x8xf32>, vector<8x8xf32>, vector<4x8xf32> -> vector<4x8xf32>
    %91 = arith.addf %78, %90 : vector<4x8xf32>
    %c5_64 = arith.constant 5 : index
    %c0_65 = arith.constant 0 : index
    %c0_66 = arith.constant 0 : index
    %92 = vector.load %arg11[%c5_64, %c0_65, %c0_66] : memref<6x1x8xf32, #tpu.memory_space<vmem>>, vector<1x1x8xf32>
    %93 = vector.shape_cast %92 : vector<1x1x8xf32> to vector<1x8xf32>
    %94 = vector.broadcast %93 : vector<1x8xf32> to vector<4x8xf32>
    %95 = arith.addf %91, %94 : vector<4x8xf32>
    %c0_67 = arith.constant 0 : index
    %c0_68 = arith.constant 0 : index
    %96 = vector.load %arg13[%c0_67, %c0_68] : memref<4x6xf32, #tpu.memory_space<vmem>>, vector<4x6xf32>
    %c0_69 = arith.constant 0 : index
    %c0_70 = arith.constant 0 : index
    %97 = vector.load %arg3[%c0_69, %c0_70] : memref<4x8xf32, #tpu.memory_space<vmem>>, vector<4x8xf32>
    %c0_71 = arith.constant 0 : index
    %c0_72 = arith.constant 0 : index
    %98 = vector.load %arg12[%c0_71, %c0_72] : memref<16x6xf32, #tpu.memory_space<vmem>>, vector<8x6xf32>
    %cst_73 = arith.constant dense<0.000000e+00> : vector<4x6xf32>
    %99 = tpu.matmul %97, %98, %cst_73 {dimension_numbers = #tpu.dot_dimension_numbers<[1], [0], [0], [1], [0, 0, 1, 1], [], []>} : vector<4x8xf32>, vector<8x6xf32>, vector<4x6xf32> -> vector<4x6xf32>
    %c8_74 = arith.constant 8 : index
    %c0_75 = arith.constant 0 : index
    %100 = vector.load %arg12[%c8_74, %c0_75] : memref<16x6xf32, #tpu.memory_space<vmem>>, vector<8x6xf32>
    %cst_76 = arith.constant dense<0.000000e+00> : vector<4x6xf32>
    %101 = tpu.matmul %95, %100, %cst_76 {dimension_numbers = #tpu.dot_dimension_numbers<[1], [0], [0], [1], [0, 0, 1, 1], [], []>} : vector<4x8xf32>, vector<8x6xf32>, vector<4x6xf32> -> vector<4x6xf32>
    %102 = arith.addf %99, %101 : vector<4x6xf32>
    %103 = vector.extract_strided_slice %96 {offsets = [0, 0], sizes = [1, 6], strides = [1, 1]} : vector<4x6xf32> to vector<1x6xf32>
    %104 = vector.broadcast %103 : vector<1x6xf32> to vector<4x6xf32>
    %105 = arith.addf %102, %104 : vector<4x6xf32>
    %106 = vector.extract_strided_slice %96 {offsets = [1, 0], sizes = [1, 6], strides = [1, 1]} : vector<4x6xf32> to vector<1x6xf32>
    %107 = vector.extract_strided_slice %96 {offsets = [2, 0], sizes = [2, 6], strides = [1, 1]} : vector<4x6xf32> to vector<2x6xf32>
    %cst_77 = arith.constant 0.000000e+00 : f32
    %108 = vector.broadcast %cst_77 : f32 to vector<1x2xf32>
    %109 = vector.extract_strided_slice %105 {offsets = [0, 0], sizes = [1, 6], strides = [1, 1]} : vector<4x6xf32> to vector<1x6xf32>
    %110 = vector.extract_strided_slice %108 {offsets = [0, 0], sizes = [1, 1], strides = [1, 1]} : vector<1x2xf32> to vector<1x1xf32>
    %111 = vector.extract_strided_slice %107 {offsets = [0, 0], sizes = [1, 6], strides = [1, 1]} : vector<2x6xf32> to vector<1x6xf32>
    %112 = vector.broadcast %110 : vector<1x1xf32> to vector<1x6xf32>
    %113 = arith.mulf %112, %111 : vector<1x6xf32>
    %114 = arith.addf %106, %113 : vector<1x6xf32>
    %115 = vector.extract_strided_slice %108 {offsets = [0, 1], sizes = [1, 1], strides = [1, 1]} : vector<1x2xf32> to vector<1x1xf32>
    %116 = vector.extract_strided_slice %107 {offsets = [1, 0], sizes = [1, 6], strides = [1, 1]} : vector<2x6xf32> to vector<1x6xf32>
    %117 = vector.broadcast %115 : vector<1x1xf32> to vector<1x6xf32>
    %118 = arith.mulf %117, %116 : vector<1x6xf32>
    %119 = arith.addf %114, %118 : vector<1x6xf32>
    %120 = vector.extract_strided_slice %109 {offsets = [0, 0], sizes = [1, 2], strides = [1, 1]} : vector<1x6xf32> to vector<1x2xf32>
    %121 = vector.extract_strided_slice %119 {offsets = [0, 0], sizes = [1, 2], strides = [1, 1]} : vector<1x6xf32> to vector<1x2xf32>
    %122 = arith.addf %120, %121 : vector<1x2xf32>
    %123 = arith.negf %122 : vector<1x2xf32>
    %124 = math.exp %123 : vector<1x2xf32>
    %cst_78 = arith.constant 1.000000e+00 : f32
    %125 = vector.broadcast %cst_78 : f32 to vector<1x2xf32>
    %126 = arith.addf %125, %124 : vector<1x2xf32>
    %127 = arith.divf %125, %126 : vector<1x2xf32>
    %128 = vector.extract_strided_slice %109 {offsets = [0, 2], sizes = [1, 2], strides = [1, 1]} : vector<1x6xf32> to vector<1x2xf32>
    %129 = vector.extract_strided_slice %119 {offsets = [0, 2], sizes = [1, 2], strides = [1, 1]} : vector<1x6xf32> to vector<1x2xf32>
    %130 = arith.addf %128, %129 : vector<1x2xf32>
    %131 = arith.negf %130 : vector<1x2xf32>
    %132 = math.exp %131 : vector<1x2xf32>
    %cst_79 = arith.constant 1.000000e+00 : f32
    %133 = vector.broadcast %cst_79 : f32 to vector<1x2xf32>
    %134 = arith.addf %133, %132 : vector<1x2xf32>
    %135 = arith.divf %133, %134 : vector<1x2xf32>
    %136 = vector.extract_strided_slice %109 {offsets = [0, 4], sizes = [1, 2], strides = [1, 1]} : vector<1x6xf32> to vector<1x2xf32>
    %137 = vector.extract_strided_slice %119 {offsets = [0, 4], sizes = [1, 2], strides = [1, 1]} : vector<1x6xf32> to vector<1x2xf32>
    %138 = arith.mulf %127, %137 : vector<1x2xf32>
    %139 = arith.addf %136, %138 : vector<1x2xf32>
    %140 = math.tanh %139 : vector<1x2xf32>
    %cst_80 = arith.constant 1.000000e+00 : f32
    %141 = vector.broadcast %cst_80 : f32 to vector<1x2xf32>
    %142 = arith.subf %141, %135 : vector<1x2xf32>
    %143 = arith.mulf %142, %140 : vector<1x2xf32>
    %144 = arith.mulf %135, %108 : vector<1x2xf32>
    %145 = arith.addf %143, %144 : vector<1x2xf32>
    %146 = vector.extract_strided_slice %105 {offsets = [1, 0], sizes = [1, 6], strides = [1, 1]} : vector<4x6xf32> to vector<1x6xf32>
    %147 = vector.extract_strided_slice %145 {offsets = [0, 0], sizes = [1, 1], strides = [1, 1]} : vector<1x2xf32> to vector<1x1xf32>
    %148 = vector.extract_strided_slice %107 {offsets = [0, 0], sizes = [1, 6], strides = [1, 1]} : vector<2x6xf32> to vector<1x6xf32>
    %149 = vector.broadcast %147 : vector<1x1xf32> to vector<1x6xf32>
    %150 = arith.mulf %149, %148 : vector<1x6xf32>
    %151 = arith.addf %106, %150 : vector<1x6xf32>
    %152 = vector.extract_strided_slice %145 {offsets = [0, 1], sizes = [1, 1], strides = [1, 1]} : vector<1x2xf32> to vector<1x1xf32>
    %153 = vector.extract_strided_slice %107 {offsets = [1, 0], sizes = [1, 6], strides = [1, 1]} : vector<2x6xf32> to vector<1x6xf32>
    %154 = vector.broadcast %152 : vector<1x1xf32> to vector<1x6xf32>
    %155 = arith.mulf %154, %153 : vector<1x6xf32>
    %156 = arith.addf %151, %155 : vector<1x6xf32>
    %157 = vector.extract_strided_slice %146 {offsets = [0, 0], sizes = [1, 2], strides = [1, 1]} : vector<1x6xf32> to vector<1x2xf32>
    %158 = vector.extract_strided_slice %156 {offsets = [0, 0], sizes = [1, 2], strides = [1, 1]} : vector<1x6xf32> to vector<1x2xf32>
    %159 = arith.addf %157, %158 : vector<1x2xf32>
    %160 = arith.negf %159 : vector<1x2xf32>
    %161 = math.exp %160 : vector<1x2xf32>
    %cst_81 = arith.constant 1.000000e+00 : f32
    %162 = vector.broadcast %cst_81 : f32 to vector<1x2xf32>
    %163 = arith.addf %162, %161 : vector<1x2xf32>
    %164 = arith.divf %162, %163 : vector<1x2xf32>
    %165 = vector.extract_strided_slice %146 {offsets = [0, 2], sizes = [1, 2], strides = [1, 1]} : vector<1x6xf32> to vector<1x2xf32>
    %166 = vector.extract_strided_slice %156 {offsets = [0, 2], sizes = [1, 2], strides = [1, 1]} : vector<1x6xf32> to vector<1x2xf32>
    %167 = arith.addf %165, %166 : vector<1x2xf32>
    %168 = arith.negf %167 : vector<1x2xf32>
    %169 = math.exp %168 : vector<1x2xf32>
    %cst_82 = arith.constant 1.000000e+00 : f32
    %170 = vector.broadcast %cst_82 : f32 to vector<1x2xf32>
    %171 = arith.addf %170, %169 : vector<1x2xf32>
    %172 = arith.divf %170, %171 : vector<1x2xf32>
    %173 = vector.extract_strided_slice %146 {offsets = [0, 4], sizes = [1, 2], strides = [1, 1]} : vector<1x6xf32> to vector<1x2xf32>
    %174 = vector.extract_strided_slice %156 {offsets = [0, 4], sizes = [1, 2], strides = [1, 1]} : vector<1x6xf32> to vector<1x2xf32>
    %175 = arith.mulf %164, %174 : vector<1x2xf32>
    %176 = arith.addf %173, %175 : vector<1x2xf32>
    %177 = math.tanh %176 : vector<1x2xf32>
    %cst_83 = arith.constant 1.000000e+00 : f32
    %178 = vector.broadcast %cst_83 : f32 to vector<1x2xf32>
    %179 = arith.subf %178, %172 : vector<1x2xf32>
    %180 = arith.mulf %179, %177 : vector<1x2xf32>
    %181 = arith.mulf %172, %145 : vector<1x2xf32>
    %182 = arith.addf %180, %181 : vector<1x2xf32>
    %183 = vector.extract_strided_slice %105 {offsets = [2, 0], sizes = [1, 6], strides = [1, 1]} : vector<4x6xf32> to vector<1x6xf32>
    %184 = vector.extract_strided_slice %182 {offsets = [0, 0], sizes = [1, 1], strides = [1, 1]} : vector<1x2xf32> to vector<1x1xf32>
    %185 = vector.extract_strided_slice %107 {offsets = [0, 0], sizes = [1, 6], strides = [1, 1]} : vector<2x6xf32> to vector<1x6xf32>
    %186 = vector.broadcast %184 : vector<1x1xf32> to vector<1x6xf32>
    %187 = arith.mulf %186, %185 : vector<1x6xf32>
    %188 = arith.addf %106, %187 : vector<1x6xf32>
    %189 = vector.extract_strided_slice %182 {offsets = [0, 1], sizes = [1, 1], strides = [1, 1]} : vector<1x2xf32> to vector<1x1xf32>
    %190 = vector.extract_strided_slice %107 {offsets = [1, 0], sizes = [1, 6], strides = [1, 1]} : vector<2x6xf32> to vector<1x6xf32>
    %191 = vector.broadcast %189 : vector<1x1xf32> to vector<1x6xf32>
    %192 = arith.mulf %191, %190 : vector<1x6xf32>
    %193 = arith.addf %188, %192 : vector<1x6xf32>
    %194 = vector.extract_strided_slice %183 {offsets = [0, 0], sizes = [1, 2], strides = [1, 1]} : vector<1x6xf32> to vector<1x2xf32>
    %195 = vector.extract_strided_slice %193 {offsets = [0, 0], sizes = [1, 2], strides = [1, 1]} : vector<1x6xf32> to vector<1x2xf32>
    %196 = arith.addf %194, %195 : vector<1x2xf32>
    %197 = arith.negf %196 : vector<1x2xf32>
    %198 = math.exp %197 : vector<1x2xf32>
    %cst_84 = arith.constant 1.000000e+00 : f32
    %199 = vector.broadcast %cst_84 : f32 to vector<1x2xf32>
    %200 = arith.addf %199, %198 : vector<1x2xf32>
    %201 = arith.divf %199, %200 : vector<1x2xf32>
    %202 = vector.extract_strided_slice %183 {offsets = [0, 2], sizes = [1, 2], strides = [1, 1]} : vector<1x6xf32> to vector<1x2xf32>
    %203 = vector.extract_strided_slice %193 {offsets = [0, 2], sizes = [1, 2], strides = [1, 1]} : vector<1x6xf32> to vector<1x2xf32>
    %204 = arith.addf %202, %203 : vector<1x2xf32>
    %205 = arith.negf %204 : vector<1x2xf32>
    %206 = math.exp %205 : vector<1x2xf32>
    %cst_85 = arith.constant 1.000000e+00 : f32
    %207 = vector.broadcast %cst_85 : f32 to vector<1x2xf32>
    %208 = arith.addf %207, %206 : vector<1x2xf32>
    %209 = arith.divf %207, %208 : vector<1x2xf32>
    %210 = vector.extract_strided_slice %183 {offsets = [0, 4], sizes = [1, 2], strides = [1, 1]} : vector<1x6xf32> to vector<1x2xf32>
    %211 = vector.extract_strided_slice %193 {offsets = [0, 4], sizes = [1, 2], strides = [1, 1]} : vector<1x6xf32> to vector<1x2xf32>
    %212 = arith.mulf %201, %211 : vector<1x2xf32>
    %213 = arith.addf %210, %212 : vector<1x2xf32>
    %214 = math.tanh %213 : vector<1x2xf32>
    %cst_86 = arith.constant 1.000000e+00 : f32
    %215 = vector.broadcast %cst_86 : f32 to vector<1x2xf32>
    %216 = arith.subf %215, %209 : vector<1x2xf32>
    %217 = arith.mulf %216, %214 : vector<1x2xf32>
    %218 = arith.mulf %209, %182 : vector<1x2xf32>
    %219 = arith.addf %217, %218 : vector<1x2xf32>
    %220 = vector.extract_strided_slice %105 {offsets = [3, 0], sizes = [1, 6], strides = [1, 1]} : vector<4x6xf32> to vector<1x6xf32>
    %221 = vector.extract_strided_slice %219 {offsets = [0, 0], sizes = [1, 1], strides = [1, 1]} : vector<1x2xf32> to vector<1x1xf32>
    %222 = vector.extract_strided_slice %107 {offsets = [0, 0], sizes = [1, 6], strides = [1, 1]} : vector<2x6xf32> to vector<1x6xf32>
    %223 = vector.broadcast %221 : vector<1x1xf32> to vector<1x6xf32>
    %224 = arith.mulf %223, %222 : vector<1x6xf32>
    %225 = arith.addf %106, %224 : vector<1x6xf32>
    %226 = vector.extract_strided_slice %219 {offsets = [0, 1], sizes = [1, 1], strides = [1, 1]} : vector<1x2xf32> to vector<1x1xf32>
    %227 = vector.extract_strided_slice %107 {offsets = [1, 0], sizes = [1, 6], strides = [1, 1]} : vector<2x6xf32> to vector<1x6xf32>
    %228 = vector.broadcast %226 : vector<1x1xf32> to vector<1x6xf32>
    %229 = arith.mulf %228, %227 : vector<1x6xf32>
    %230 = arith.addf %225, %229 : vector<1x6xf32>
    %231 = vector.extract_strided_slice %220 {offsets = [0, 0], sizes = [1, 2], strides = [1, 1]} : vector<1x6xf32> to vector<1x2xf32>
    %232 = vector.extract_strided_slice %230 {offsets = [0, 0], sizes = [1, 2], strides = [1, 1]} : vector<1x6xf32> to vector<1x2xf32>
    %233 = arith.addf %231, %232 : vector<1x2xf32>
    %234 = arith.negf %233 : vector<1x2xf32>
    %235 = math.exp %234 : vector<1x2xf32>
    %cst_87 = arith.constant 1.000000e+00 : f32
    %236 = vector.broadcast %cst_87 : f32 to vector<1x2xf32>
    %237 = arith.addf %236, %235 : vector<1x2xf32>
    %238 = arith.divf %236, %237 : vector<1x2xf32>
    %239 = vector.extract_strided_slice %220 {offsets = [0, 2], sizes = [1, 2], strides = [1, 1]} : vector<1x6xf32> to vector<1x2xf32>
    %240 = vector.extract_strided_slice %230 {offsets = [0, 2], sizes = [1, 2], strides = [1, 1]} : vector<1x6xf32> to vector<1x2xf32>
    %241 = arith.addf %239, %240 : vector<1x2xf32>
    %242 = arith.negf %241 : vector<1x2xf32>
    %243 = math.exp %242 : vector<1x2xf32>
    %cst_88 = arith.constant 1.000000e+00 : f32
    %244 = vector.broadcast %cst_88 : f32 to vector<1x2xf32>
    %245 = arith.addf %244, %243 : vector<1x2xf32>
    %246 = arith.divf %244, %245 : vector<1x2xf32>
    %247 = vector.extract_strided_slice %220 {offsets = [0, 4], sizes = [1, 2], strides = [1, 1]} : vector<1x6xf32> to vector<1x2xf32>
    %248 = vector.extract_strided_slice %230 {offsets = [0, 4], sizes = [1, 2], strides = [1, 1]} : vector<1x6xf32> to vector<1x2xf32>
    %249 = arith.mulf %238, %248 : vector<1x2xf32>
    %250 = arith.addf %247, %249 : vector<1x2xf32>
    %251 = math.tanh %250 : vector<1x2xf32>
    %cst_89 = arith.constant 1.000000e+00 : f32
    %252 = vector.broadcast %cst_89 : f32 to vector<1x2xf32>
    %253 = arith.subf %252, %246 : vector<1x2xf32>
    %254 = arith.mulf %253, %251 : vector<1x2xf32>
    %255 = arith.mulf %246, %219 : vector<1x2xf32>
    %256 = arith.addf %254, %255 : vector<1x2xf32>
    %257 = arith.negf %256 : vector<1x2xf32>
    %258 = math.exp %257 : vector<1x2xf32>
    %cst_90 = arith.constant 1.000000e+00 : f32
    %259 = vector.broadcast %cst_90 : f32 to vector<1x2xf32>
    %260 = arith.addf %259, %258 : vector<1x2xf32>
    %261 = arith.divf %259, %260 : vector<1x2xf32>
    %c0_91 = arith.constant 0 : index
    %c0_92 = arith.constant 0 : index
    %262 = vector.load %arg14[%c0_91, %c0_92] : memref<1x2xf32, #tpu.memory_space<vmem>>, vector<1x2xf32>
    tpu.vector_store %arg14[%c0_91, %c0_92], %261 {strides = array<i32>} : memref<1x2xf32, #tpu.memory_space<vmem>>, vector<1x2xf32>,
    return
  }
}

</mosaic_0001>

<bundles_post_ra>
// kernel: arch_forward.1
= control target key start
LH: loop header
LB: loop body
LE: loop exit
PB: predicated region body
PF: predicated region fallthrough
CT: control target
= control target key end

     0   :  { %v1662_v2 = vmov 0.0|0.0   ;;  %vm1663_vm0 = vmmov 0   ;;  %v1664_v4 = vmov 0.0   ;;  %s1946_s0 = inlined_call_operand.vmem [shape: f32[4,16], index: 0, kind: input, shape index: {}]   ;;  %s1947_s1 = inlined_call_operand.vmem [shape: f32[4,15], index: 1, kind: input, shape index: {}]   ;;  %s1948_s2 = inlined_call_operand.vmem [shape: f32[4,14], index: 2, kind: input, shape index: {}]   ;;  %s1949_s3 = inlined_call_operand.vmem [shape: f32[4,8], index: 3, kind: input, shape index: {}]   ;;  %s1950_s4 = inlined_call_operand.vmem [shape: f32[17,8], index: 4, kind: input, shape index: {}]   ;;  %s1951_s5 = inlined_call_operand.vmem [shape: f32[9,3], index: 5, kind: input, shape index: {}]   ;;  %s1952_s6 = inlined_call_operand.vmem [shape: f32[16,8], index: 6, kind: input, shape index: {}]   ;;  %s1953_s7 = inlined_call_operand.vmem [shape: f32[15,8], index: 7, kind: input, shape index: {}]   ;;  %s1954_s8 = inlined_call_operand.vmem [shape: f32[14,8], index: 8, kind: input, shape index: {}]   ;;  %s1955_s9 = inlined_call_operand.vmem [shape: f32[3,8], index: 9, kind: input, shape index: {}]   ;;  %s1956_s10 = inlined_call_operand.vmem [shape: f32[6,8,8], index: 10, kind: input, shape index: {}]   ;;  %s1957_s11 = inlined_call_operand.vmem [shape: f32[6,1,8], index: 11, kind: input, shape index: {}]   ;;  %s1958_s12 = inlined_call_operand.vmem [shape: f32[16,6], index: 12, kind: input, shape index: {}]   ;;  %s1959_s13 = inlined_call_operand.vmem [shape: f32[4,6], index: 13, kind: input, shape index: {}]   ;;  %s1960_s14 = inlined_call_operand.hbm [shape: f32[1,2], index: 14, kind: output, shape index: {}]  }
   0x1   :  { %v49_v0 = vld [vmem:[%s1950_s4] sm:$0xff]  ;;  %v50_v1 = vld [vmem:[%s1950_s4 + $0x8] sm:$0xff]  ;;  %1572 = vmatprep.subr.bf16.mxu0 %v1662_v2  ;;  %1498 = vmatprep.mubr.msk.f32.mxu0 %vm1663_vm0, %v1664_v4 }
   0x2   :  { %v1573_v3 = vpack.c.bf16 %v50_v1, %v49_v0 }
   0x3   :  { %19 = vsyncpa [#allocation3], 0  ;;  %1501 = vmatprep.subr.mxu1 %v1664_v4  ;;  %1503 = vmatprep.mubr.msk.f32.mxu1 %vm1663_vm0, %v1664_v4  ;;  %v48_v5 = vld [vmem:[%s1946_s0] sm:$0xf]  ;;  %vm56_vm1 = vcmask 130048   ;;  %vm137_vm2 = vcmask 64512  }
   0x4   :  { %1574 = vmatpush3.bf16.msra.mxu0 %v1573_v3  ;;  %v131_v6 = vld [vmem:[%s1951_s5] sm:$0xff]  ;;  %v1422_v7 = vld [vmem:[%s1950_s4 + $0x10] ss:$0 sm:$0xff]  ;;  %v1424_v12 = vld [vmem:[%s1951_s5 + $0x8] ss:$0 sm:$0xff]  ;;  %vm211_vm3 = vcmask 19456  }
   0x5   :  { %1578 = vmatprep.subr.bf16.mxu0 %v1662_v2  ;;  %1502 = vmatpush3.msra.mxu1 %v131_v6  ;;  %v223_v17 = vld [vmem:[%s1952_s6] sm:$0xff]  ;;  %v224_v18 = vld [vmem:[%s1952_s6 + $0x8] sm:$0xff]  ;;  %vm383_vm4 = vcmask 1045504   ;;  %vm302_vm5 = vcmask 1046528   ;;  %vm1665_vm6 = vmmov 1   ;;  %vm298_vm9 = vcmask 121856  }
   0x6   :  { %1575 = vmatprep.subr.bf16.mxu1 %v1662_v2  ;;  %v377_v19 = vld [vmem:[%s1954_s8] sm:$0xff]  ;;  %v1576_v20 = vpack.c.bf16 %v224_v18, %v223_v17  ;;  %v378_v21 = vld [vmem:[%s1954_s8 + $0x8] sm:$0x3f]  ;;  %vm1580_vm7 = vmpackc.low %vm302_vm5, %vm1665_vm6  ;;  %vm379_vm10 = vcmask 113664   ;;  %vm479_vm11 = vcmask 1042432   ;;  %v1666_v34 = vmov 2  }
   0x7   :  { %1499 = vmatmul.mubr.msk.f32.vlgmr.msra.gmra.mrb[0].mxu0 %vm56_vm1, %v48_v5  ;;  %v296_v22 = vld [vmem:[%s1953_s7] sm:$0xff]  ;;  %v297_v23 = vld [vmem:[%s1953_s7 + $0x8] sm:$0x7f]  ;;  %v1583_v24 = vpack.c.bf16 %v378_v21, %v377_v19  ;;  %vm1584_vm8 = vmpackc.low %vm383_vm4, %vm1665_vm6  ;;  %1600 = vset.pattern.permute.xlu0 %v1666_v34  ;;  %v1667_v35 = vmov 0   ;;  %vm476_vm12 = vcmask 23552   ;;  %v1668_v43 = vmov 1  }
   0x8   :  { %1517 = vmatprep.mubr.msk.f32.mxu0 %vm1663_vm0, %v1664_v4  ;;  %v1579_v25 = vpack.c.bf16 %v297_v23, %v296_v22  ;;  %v295_v26 = vld [vmem:[%s1947_s1] sm:$0xf]  ;;  %1598 = vset.pattern.permute.xlu1 %v1667_v35  ;;  %v1435_v58 = vld [vmem:[%s1956_s10 + $0x8] sm:$0xff]  ;;  %v1439_v0 = vld [vmem:[%s1956_s10 + $0x10] sm:$0xff]  ;;  %s1673_s0 = smov [#allocation2]   ;;  %vm1406_vm13 = vcmask 11267  }
   0x9   :  { %v376_v27 = vld [vmem:[%s1948_s2] sm:$0xf]  ;;  %v1451_v19 = vld [vmem:[%s1956_s10 + $0x28] sm:$0xff]  ;;  %s1414_s23 = sshll.u32 %s1673_s0, 4  ;;  %s1415_s23 = int_to_ptr.vmem [resolvable:$true] %s1414_s23 }
   0xa   :  { %1581 = vmatpush3.bf16.msk.msra.mxu0 %vm1580_vm7, %v1579_v25  ;;  %v475_v33 = vld [vmem:[%s1955_s9] sm:$0x7]  ;;  %s1638_s4 = scalar_lea.vmem %s1415_s23, 16  ;;  %s1642_s24 = scalar_lea.vmem %s1415_s23, 32 }
   0xb   :  { %1527 = vmatprep.subr.mxu0 %v1664_v4  ;;  %v554_v46 = vld [vmem:[%s1956_s10] sm:$0xff]  ;;  %p1639_p0 = scmp.ne.s32.totalorder %s1415_s23, %s1638_s4  ;;  %p1643_p1 = scmp.lt.s32.totalorder %s1415_s23, %s1415_s23 }
   0xc   :  { %v1433_v59 = vld [vmem:[%s1957_s11] ss:$0 sm:$0xff]  ;;  %p1644_p2 = scmp.lt.s32.totalorder %s1642_s24, %s1638_s4 }
   0xd   :  { %1518 = vmatmul.mubr.msk.f32.vlgmr.msra.gmra.mrb[2].mxu0 %vm298_vm9, %v295_v26  ;;  %v1061_v25 = vld [vmem:[%s1958_s12] sm:$0xff]  ;;  %v1062_v26 = vld [vmem:[%s1958_s12 + $0x8] sm:$0xff]  ;;  %s1669_s12 = smov 124  }
   0xe   :  { %1529 = vmatprep.mubr.msk.f32.mxu0 %vm1663_vm0, %v1664_v4  ;;  %1528 = vmatpush3.msk.msra.mxu0 %vm479_vm11, %v475_v33  ;;  %p1645_p3 = por %p1644_p2, %p1643_p1 }
   0xf   :  { %1537 = vmatprep.subr.mxu0 %v1664_v4 }
  0x10   :  { %p1646_p4 = pnand %p1645_p3, %p1639_p0 }
  0xda   :  { %v126_v8 = vpop.f32.mrb[0].mxu0 }
  0xdb   :  { %v127_v9 = vadd.f32 %v1422_v7, %v126_v8  ;;  %v1500_v10 = vpop.f32.mrb[1].mxu0  ;;  %v1443_v7 = vld [vmem:[%s1956_s10 + $0x18] sm:$0xff]  ;;  %v1441_v8 = vld [vmem:[%s1957_s11 + $0x2] ss:$0 sm:$0xff] }
  0xdd   :  { %v130_v11 = vmax.f32 %v127_v9, 0.0 }
  0xdf   :  { %1504 = vmatmul.mubr.msk.f32.vlgmr.msra.gmra.mrb[0].mxu1 %vm137_vm2, %v130_v11 }
  0xe0   :  { %1510 = vmatprep.mubr.msk.f32.mxu1 %vm1663_vm0, %v1664_v4  ;;  %1577 = vmatpush3.bf16.msra.mxu1 %v1576_v20  ;;  %v372_v44 = vpop.f32.mrb[2].mxu0  ;;  %v1449_v20 = vld [vmem:[%s1957_s11 + $0x4] ss:$0 sm:$0xff] }
  0xe1   :  { %1582 = vmatprep.subr.bf16.mxu1 %v1662_v2  ;;  %v1519_v45 = vpop.f32.mrb[3].mxu0  ;;  %v1438_v2 = vld [vmem:[%s1957_s11 + $0x1] ss:$0 sm:$0xff] }
  0xe3   :  { %1511 = vmatmul.mubr.msk.f32.vlgmr.msra.gmra.mrb[2].mxu1 %vm56_vm1, %v48_v5 }
  0xe4   :  { %1585 = vmatpush3.bf16.msk.msra.mxu1 %vm1584_vm8, %v1583_v24  ;;  %1524 = vmatprep.mubr.msk.f32.mxu1 %vm1663_vm0, %v1664_v4 }
  0xe5   :  { %1532 = vmatprep.subr.mxu1 %v1664_v4 }
  0xe7   :  { %1525 = vmatmul.mubr.msk.f32.vlgmr.msra.gmra.mrb[4].mxu1 %vm379_vm10, %v376_v27  ;;  %v1060_v27 = vld [vmem:[%s1949_s3] sm:$0xf] }
  0xe8   :  { %1534 = vmatprep.mubr.msk.f32.mxu1 %vm1663_vm0, %v1664_v4  ;;  %1533 = vmatpush3.msra.mxu1 %v554_v46 }
  0xe9   :  { %1542 = vmatprep.subr.mxu1 %v1664_v4 }
 0x1b2   :  { %v207_v13 = vpop.f32.mrb[0].mxu1 }
 0x1b3   :  { %v208_v14 = vadd.f32 %v1424_v12, %v207_v13  ;;  %v1505_v15 = vpop.f32.mrb[1].mxu1  ;;  %v1447_v13 = vld [vmem:[%s1956_s10 + $0x20] sm:$0xff] }
 0x1b4   :  { %v1446_v15 = vld [vmem:[%s1957_s11 + $0x3] ss:$0 sm:$0xff] }
 0x1b5   :  { %v212_v16 = vsel %vm211_vm3, %v208_v14, -inf }
 0x1b6   :  { %213 = vmax.xlane.f32.xlu0 %v212_v16  ;;  %v291_v36 = vpop.f32.mrb[2].mxu1 }
 0x1b7   :  { %v1512_v37 = vpop.f32.mrb[3].mxu1 }
 0x1ba   :  { %v453_v41 = vpop.f32.mrb[4].mxu1 }
 0x1bb   :  { %v1526_v42 = vpop.f32.mrb[5].mxu1 }
 0x1bc   :  { %v1209_v42 = vlaneseq }
 0x243   :  { %v214_v28 = vpop.xlane.xlu0 %213 }
 0x244   :  { %v215_v29 = vsub.f32 %v208_v14, %v214_v28 }
 0x246   :  { %v216_v30 = vmul.f32 1.442695, %v215_v29 }
 0x248   :  { %1606 = vpow2.f32 %v216_v30 }
 0x252   :  { %v1607_v31 = vpop.eup %1606 }
 0x253   :  { %v218_v32 = vsel %vm211_vm3, %v1607_v31, 0.0 }
 0x254   :  { %219 = vadd.xlane.f32.xlu0 %v218_v32 }
 0x2e1   :  { %v220_v38 = vpop.xlane.xlu0 %219 }
 0x2e2   :  { %1608 = vrcp.f32 %v220_v38 }
 0x2ec   :  { %v1609_v39 = vpop.eup %1608 }
 0x2ed   :  { %v222_v40 = vmul.f32 %v1609_v39, %v1607_v31 }
 0x2ef   :  { %470 = vperm.xlu0 %1600, %v222_v40   ;;  %459 = vperm.xlu1 %1598, %v222_v40  }
 0x2f0   :  { %1530 = vmatmul.mubr.msk.f32.vlgmr.msra.gmra.mrb[4].mxu0 %vm476_vm12, %v222_v40 }
 0x2f1   :  { %1539 = vmatprep.mubr.msk.f32.mxu0 %vm1663_vm0, %v1664_v4  ;;  %1538 = vmatpush3.msra.mxu0 %v1435_v58 }
 0x2f2   :  { %1547 = vmatprep.subr.mxu0 %v1664_v4 }
 0x2f3   :  { %1599 = vset.pattern.permute.xlu1 %v1668_v43  ;;  %v1210_v43 = vshrl.u32 %v1209_v42, 7 }
 0x2f4   :  { %464 = vperm.xlu1 %1599, %v222_v40  }
 0x2f8   :  { %1601 = vset.pattern.permute.xlu1 %v1666_v34 }
 0x36e   :  { %v460_v47 = vpop.permute.xlu1 %459  ;;  %v471_v48 = vpop.permute.xlu0 %470 }
 0x36f   :  { %v462_v50 = vmul.f32 %v460_v47, %v291_v36  ;;  %v473_v52 = vmul.f32 %v471_v48, %v453_v41  ;;  %v1454_v36 = vld [vmem:[%s1957_s11 + $0x5] ss:$0 sm:$0xff]  ;;  %s1670_s11 = smov 4  }
 0x373   :  { %v465_v49 = vpop.permute.xlu1 %464 }
 0x374   :  { %v467_v51 = vmul.f32 %v465_v49, %v372_v44  ;;  %v1211_v44 = vsub.s32 0, %v1210_v43 }
 0x376   :  { %v468_v53 = vadd.f32 %v467_v51, %v462_v50 }
 0x378   :  { %v474_v54 = vadd.f32 %v473_v52, %v468_v53 }
 0x3c3   :  { %v549_v55 = vpop.f32.mrb[4].mxu0 }
 0x3c4   :  { %v553_v56 = vadd.f32 %v549_v55, %v474_v54  ;;  %v1531_v57 = vpop.f32.mrb[5].mxu0 }
 0x3c6   :  { %1535 = vmatmul.mubr.msk.f32.vlgmr.msra.gmra.mrb[6].mxu1 %vm137_vm2, %v553_v56 }
 0x3c7   :  { %1544 = vmatprep.mubr.msk.f32.mxu1 %vm1663_vm0, %v1664_v4  ;;  %1543 = vmatpush3.msra.mxu1 %v1439_v0 }
 0x3c8   :  { %1552 = vmatprep.subr.mxu1 %v1664_v4 }
 0x499   :  { %v631_v60 = vpop.f32.mrb[6].mxu1 }
 0x49a   :  { %v632_v61 = vadd.f32 %v1433_v59, %v631_v60  ;;  %v1536_v62 = vpop.f32.mrb[7].mxu1 }
 0x49c   :  { %v635_v63 = vmax.f32 %v632_v61, 0.0 }
 0x49e   :  { %1540 = vmatmul.mubr.msk.f32.vlgmr.msra.gmra.mrb[6].mxu0 %vm137_vm2, %v635_v63 }
 0x49f   :  { %1549 = vmatprep.mubr.msk.f32.mxu0 %vm1663_vm0, %v1664_v4  ;;  %1548 = vmatpush3.msra.mxu0 %v1443_v7 }
 0x4a0   :  { %1557 = vmatprep.subr.mxu0 %v1664_v4 }
 0x571   :  { %v707_v1 = vpop.f32.mrb[6].mxu0 }
 0x572   :  { %v711_v3 = vadd.f32 %v707_v1, %v553_v56  ;;  %v1541_v5 = vpop.f32.mrb[7].mxu0  ;;  %v1672_v1 = vmov 3  }
 0x574   :  { %v720_v6 = vadd.f32 %v1438_v2, %v711_v3 }
 0x576   :  { %1545 = vmatmul.mubr.msk.f32.vlgmr.msra.gmra.mrb[8].mxu1 %vm137_vm2, %v720_v6 }
 0x577   :  { %1554 = vmatprep.mubr.msk.f32.mxu1 %vm1663_vm0, %v1664_v4  ;;  %1553 = vmatpush3.msra.mxu1 %v1447_v13 }
 0x578   :  { %1562 = vmatprep.subr.mxu1 %v1664_v4 }
 0x649   :  { %v800_v9 = vpop.f32.mrb[8].mxu1 }
 0x64a   :  { %v801_v10 = vadd.f32 %v1441_v8, %v800_v9  ;;  %v1546_v11 = vpop.f32.mrb[9].mxu1 }
 0x64c   :  { %v804_v12 = vmax.f32 %v801_v10, 0.0 }
 0x64e   :  { %1550 = vmatmul.mubr.msk.f32.vlgmr.msra.gmra.mrb[8].mxu0 %vm137_vm2, %v804_v12 }
 0x64f   :  { %1559 = vmatprep.mubr.msk.f32.mxu0 %vm1663_vm0, %v1664_v4  ;;  %1558 = vmatpush3.msra.mxu0 %v1451_v19 }
 0x650   :  { %1567 = vmatprep.subr.mxu0 %v1664_v4 }
 0x721   :  { %v876_v14 = vpop.f32.mrb[8].mxu0 }
 0x722   :  { %v880_v16 = vadd.f32 %v876_v14, %v720_v6  ;;  %v1551_v17 = vpop.f32.mrb[9].mxu0 }
 0x724   :  { %v889_v18 = vadd.f32 %v1446_v15, %v880_v16 }
 0x726   :  { %1555 = vmatmul.mubr.msk.f32.vlgmr.msra.gmra.mrb[10].mxu1 %vm137_vm2, %v889_v18 }
 0x727   :  { %1564 = vmatprep.mubr.msk.f32.mxu1 %vm1663_vm0, %v1664_v4  ;;  %1563 = vmatpush3.msra.mxu1 %v1062_v26 }
 0x7f9   :  { %v969_v21 = vpop.f32.mrb[10].mxu1 }
 0x7fa   :  { %v970_v22 = vadd.f32 %v1449_v20, %v969_v21  ;;  %v1556_v23 = vpop.f32.mrb[11].mxu1 }
 0x7fc   :  { %v973_v24 = vmax.f32 %v970_v22, 0.0 }
 0x7fe   :  { %1560 = vmatmul.mubr.msk.f32.vlgmr.msra.gmra.mrb[10].mxu0 %vm137_vm2, %v973_v24 }
 0x7ff   :  { %1569 = vmatprep.mubr.msk.f32.mxu0 %vm1663_vm0, %v1664_v4  ;;  %1568 = vmatpush3.msra.mxu0 %v1061_v25  ;;  %v1891_v4 = vld [vmem:[%s1959_s13] sm:$0xf]  ;;  %s1671_s13 = smov 126  }
 0x800   :  { %v1214_v28 = vmul.f32 0.0, %v1891_v4  ;;  %v1212_v45 = vrot.slane %v1891_v4, %v1211_v44  ;;  %v1256_v2 = vrot.slane %v1891_v4, 2  ;;  %v1267_v6 = vrot.slane %v1891_v4, 3 }
 0x802   :  { %1570 = vmatmul.mubr.msk.f32.vlgmr.msra.gmra.mrb[12].mxu0 %vm137_vm2, %v1060_v27  ;;  %v1216_v29 = vrot.slane %v1214_v28, 1  ;;  %v1219_v30 = vrot.slane %v1214_v28, 2  ;;  %v1307_v28 = vrot.slane %v1891_v4, 1 }
 0x804   :  { %v1218_v31 = vadd.f32 %v1216_v29, %v1891_v4 }
 0x806   :  { %v1221_v32 = vadd.f32 %v1219_v30, %v1218_v31 }
 0x808   :  { %v1223_v33 = vrot.slane %v1221_v32, 1 }
 0x80a   :  { %1232 = vrot.lane.b32.xlu1 %v1223_v33, %s1669_s12 }
 0x87c   :  { %v1233_v54 = vpop.permute.xlu1 %1232 }
 0x8d1   :  { %v1045_v35 = vpop.f32.mrb[10].mxu0 }
 0x8d2   :  { %v1049_v37 = vadd.f32 %v1045_v35, %v889_v18  ;;  %v1561_v38 = vpop.f32.mrb[11].mxu0 }
 0x8d4   :  { %v1058_v39 = vadd.f32 %v1454_v36, %v1049_v37 }
 0x8d5   :  { %v1205_v40 = vpop.f32.mrb[12].mxu0 }
 0x8d6   :  { %1565 = vmatmul.mubr.msk.f32.vlgmr.msra.gmra.mrb[12].mxu1 %vm137_vm2, %v1058_v39  ;;  %v1571_v41 = vpop.f32.mrb[13].mxu0 }
 0x9a9   :  { %v1132_v46 = vpop.f32.mrb[12].mxu1 }
 0x9aa   :  { %v1206_v47 = vadd.f32 %v1205_v40, %v1132_v46  ;;  %v1566_v48 = vpop.f32.mrb[13].mxu1 }
 0x9ac   :  { %v1901_v49 = vadd.f32 %v1212_v45, %v1206_v47 }
 0x9ae   :  { %v1225_v50 = vadd.f32 %v1223_v33, %v1901_v49 }
 0x9b0   :  { %v1457_v51 = vmul.f32 -1.442695, %v1225_v50 }
 0x9b2   :  { %1610 = vpow2.f32 %v1457_v51 }
 0x9bc   :  { %v1611_v52 = vpop.eup %1610 }
 0x9bd   :  { %v1229_v53 = vadd.f32 1.0, %v1611_v52 }
 0x9bf   :  { %1612 = vrcp.f32 %v1229_v53 }
 0x9c9   :  { %v1613_v55 = vpop.eup %1612 }
 0x9ca   :  { %v1235_v56 = vmul.f32 %v1613_v55, %v1233_v54  ;;  %v1242_v60 = vsub.f32 1.0, %v1613_v55  ;;  %v1248_v62 = vmul.f32 0.0, %v1613_v55 }
 0x9cc   :  { %1237 = vrot.lane.b32.xlu1 %v1235_v56, %s1670_s11 }
 0xa3e   :  { %v1238_v57 = vpop.permute.xlu1 %1237 }
 0xa3f   :  { %v1240_v58 = vadd.f32 %v1238_v57, %v1901_v49 }
 0xa41   :  { %1614 = vtanh.f32 %v1240_v58 }
 0xa4b   :  { %v1615_v59 = vpop.eup %1614 }
 0xa4c   :  { %1244 = vrot.lane.b32.xlu1 %v1615_v59, %s1671_s13 }
 0xabe   :  { %v1245_v61 = vpop.permute.xlu1 %1244 }
 0xabf   :  { %v1247_v63 = vmul.f32 %v1245_v61, %v1242_v60 }
 0xac1   :  { %v1249_v0 = vadd.f32 %v1248_v62, %v1247_v63 }
 0xac3   :  { %1252 = vperm.xlu1 %1601, %v1249_v0   ;;  %v1298_v23 = vrot.slane %v1249_v0, 7 }
 0xac7   :  { %1602 = vset.pattern.permute.xlu1 %v1672_v1 }
 0xac8   :  { %1264 = vperm.xlu1 %1602, %v1249_v0  }
 0xacc   :  { %1603 = vset.pattern.permute.xlu1 %v1666_v34 }
 0xb42   :  { %v1253_v3 = vpop.permute.xlu1 %1252 }
 0xb43   :  { %v1258_v5 = vmul.f32 %v1256_v2, %v1253_v3 }
 0xb45   :  { %v1260_v7 = vrot.slane %v1258_v5, 7 }
 0xb47   :  { %v1265_v8 = vpop.permute.xlu1 %1264  ;;  %v1262_v10 = vadd.f32 %v1260_v7, %v1891_v4 }
 0xb48   :  { %v1269_v9 = vmul.f32 %v1267_v6, %v1265_v8 }
 0xb4a   :  { %v1271_v11 = vrot.slane %v1269_v9, 7 }
 0xb4c   :  { %v1273_v12 = vadd.f32 %v1271_v11, %v1262_v10 }
 0xb4e   :  { %1282 = vrot.lane.b32.xlu1 %v1273_v12, %s1669_s12  ;;  %v1274_v13 = vadd.f32 %v1273_v12, %v1901_v49 }
 0xb50   :  { %v1458_v14 = vmul.f32 -1.442695, %v1274_v13 }
 0xb52   :  { %1616 = vpow2.f32 %v1458_v14 }
 0xb5c   :  { %v1617_v34 = vpop.eup %1616 }
 0xb5d   :  { %v1278_v15 = vadd.f32 1.0, %v1617_v34 }
 0xb5f   :  { %1618 = vrcp.f32 %v1278_v15 }
 0xb69   :  { %v1619_v16 = vpop.eup %1618 }
 0xb6a   :  { %v1292_v22 = vsub.f32 1.0, %v1619_v16  ;;  %v1300_v26 = vmul.f32 %v1619_v16, %v1298_v23 }
 0xbc0   :  { %v1283_v17 = vpop.permute.xlu1 %1282 }
 0xbc1   :  { %v1285_v18 = vmul.f32 %v1619_v16, %v1283_v17 }
 0xbc3   :  { %1287 = vrot.lane.b32.xlu1 %v1285_v18, %s1670_s11 }
 0xc35   :  { %v1288_v19 = vpop.permute.xlu1 %1287 }
 0xc36   :  { %v1290_v20 = vadd.f32 %v1288_v19, %v1901_v49 }
 0xc38   :  { %1620 = vtanh.f32 %v1290_v20 }
 0xc42   :  { %v1621_v21 = vpop.eup %1620 }
 0xc43   :  { %1294 = vrot.lane.b32.xlu1 %v1621_v21, %s1671_s13 }
 0xcb5   :  { %v1295_v24 = vpop.permute.xlu1 %1294 }
 0xcb6   :  { %v1297_v25 = vmul.f32 %v1295_v24, %v1292_v22 }
 0xcb8   :  { %v1301_v27 = vadd.f32 %v1300_v26, %v1297_v25 }
 0xcba   :  { %1304 = vperm.xlu1 %1603, %v1301_v27   ;;  %v1343_v48 = vrot.slane %v1301_v27, 7 }
 0xcbe   :  { %1604 = vset.pattern.permute.xlu1 %v1672_v1 }
 0xcbf   :  { %1312 = vperm.xlu1 %1604, %v1301_v27  }
 0xd39   :  { %v1305_v29 = vpop.permute.xlu1 %1304 }
 0xd3a   :  { %v1309_v30 = vmul.f32 %v1307_v28, %v1305_v29 }
 0xd3c   :  { %v1310_v32 = vadd.f32 %v1309_v30, %v1891_v4 }
 0xd3e   :  { %v1313_v31 = vpop.permute.xlu1 %1312 }
 0xd3f   :  { %v1315_v33 = vmul.f32 %v1313_v31, %v1256_v2 }
 0xd41   :  { %v1316_v35 = vadd.f32 %v1315_v33, %v1310_v32 }
 0xd43   :  { %v1318_v36 = vrot.slane %v1316_v35, 7 }
 0xd45   :  { %1327 = vrot.lane.b32.xlu1 %v1318_v36, %s1669_s12  ;;  %v1320_v37 = vadd.f32 %v1318_v36, %v1901_v49 }
 0xd47   :  { %v1459_v38 = vmul.f32 -1.442695, %v1320_v37 }
 0xd49   :  { %1622 = vpow2.f32 %v1459_v38 }
 0xd53   :  { %v1623_v39 = vpop.eup %1622 }
 0xd54   :  { %v1324_v40 = vadd.f32 1.0, %v1623_v39 }
 0xd56   :  { %1624 = vrcp.f32 %v1324_v40 }
 0xd60   :  { %v1625_v41 = vpop.eup %1624 }
 0xd61   :  { %v1337_v47 = vsub.f32 1.0, %v1625_v41  ;;  %v1345_v52 = vmul.f32 %v1625_v41, %v1343_v48 }
 0xdb7   :  { %v1328_v42 = vpop.permute.xlu1 %1327 }
 0xdb8   :  { %v1330_v43 = vmul.f32 %v1625_v41, %v1328_v42 }
 0xdba   :  { %1332 = vrot.lane.b32.xlu0 %v1330_v43, %s1670_s11 }
 0xe2c   :  { %v1333_v44 = vpop.permute.xlu0 %1332 }
 0xe2d   :  { %v1335_v45 = vadd.f32 %v1333_v44, %v1901_v49 }
 0xe2f   :  { %1626 = vtanh.f32 %v1335_v45 }
 0xe39   :  { %v1627_v46 = vpop.eup %1626 }
 0xe3a   :  { %1339 = vrot.lane.b32.xlu1 %v1627_v46, %s1671_s13 }
 0xeac   :  { %v1340_v50 = vpop.permute.xlu1 %1339 }
 0xead   :  { %v1342_v51 = vmul.f32 %v1340_v50, %v1337_v47 }
 0xeaf   :  { %v1346_v53 = vadd.f32 %v1345_v52, %v1342_v51 }
 0xeb1   :  { %1358 = vperm.xlu1 %1604, %v1346_v53   ;;  %1349 = vperm.xlu0 %1600, %v1346_v53   ;;  %v1392_v10 = vrot.slane %v1346_v53, 7 }
 0xeb5   :  { %1605 = vset.pattern.permute.xlu0 %v1672_v1 }
 0xf30   :  { %v1359_v54 = vpop.permute.xlu1 %1358  ;;  %v1350_v55 = vpop.permute.xlu0 %1349 }
 0xf31   :  { %v1361_v56 = vmul.f32 %v1359_v54, %v1307_v28  ;;  %v1352_v57 = vmul.f32 %v1350_v55, %v1891_v4 }
 0xf33   :  { %v1354_v58 = vrot.slane %v1352_v57, 1  ;;  %v1363_v59 = vrot.slane %v1361_v56, 1 }
 0xf35   :  { %v1356_v60 = vadd.f32 %v1354_v58, %v1891_v4 }
 0xf37   :  { %v1365_v61 = vadd.f32 %v1363_v59, %v1356_v60 }
 0xf39   :  { %v1367_v62 = vrot.slane %v1365_v61, 6 }
 0xf3b   :  { %1376 = vrot.lane.b32.xlu0 %v1367_v62, %s1669_s12  ;;  %v1369_v63 = vadd.f32 %v1367_v62, %v1901_v49 }
 0xf3d   :  { %v1460_v0 = vmul.f32 -1.442695, %v1369_v63 }
 0xf3f   :  { %1628 = vpow2.f32 %v1460_v0 }
 0xf49   :  { %v1629_v2 = vpop.eup %1628 }
 0xf4a   :  { %v1373_v3 = vadd.f32 1.0, %v1629_v2 }
 0xf4c   :  { %1630 = vrcp.f32 %v1373_v3 }
 0xf56   :  { %v1631_v1 = vpop.eup %1630 }
 0xf57   :  { %v1386_v9 = vsub.f32 1.0, %v1631_v1  ;;  %v1394_v13 = vmul.f32 %v1631_v1, %v1392_v10 }
 0xfad   :  { %v1377_v5 = vpop.permute.xlu0 %1376 }
 0xfae   :  { %v1379_v6 = vmul.f32 %v1631_v1, %v1377_v5 }
 0xfb0   :  { %1381 = vrot.lane.b32.xlu1 %v1379_v6, %s1670_s11 }
0x1022   :  { %v1382_v7 = vpop.permute.xlu1 %1381 }
0x1023   :  { %v1384_v8 = vadd.f32 %v1382_v7, %v1901_v49 }
0x1025   :  { %1632 = vtanh.f32 %v1384_v8 }
0x102f   :  { %v1633_v4 = vpop.eup %1632 }
0x1030   :  { %1388 = vrot.lane.b32.xlu0 %v1633_v4, %s1671_s13 }
0x10a2   :  { %v1389_v11 = vpop.permute.xlu0 %1388 }
0x10a3   :  { %v1391_v12 = vmul.f32 %v1389_v11, %v1386_v9 }
0x10a5   :  { %v1395_v14 = vadd.f32 %v1394_v13, %v1391_v12 }
0x10a7   :  { %v1461_v34 = vmul.f32 -1.442695, %v1395_v14 }
0x10a9   :  { %1634 = vpow2.f32 %v1461_v34 }
0x10b3   :  { %v1635_v15 = vpop.eup %1634 }
0x10b4   :  { %v1399_v16 = vadd.f32 1.0, %v1635_v15 }
0x10b6   :  { %1636 = vrcp.f32 %v1399_v16 }
0x10c0   :  { %v1637_v17 = vpop.eup %1636 }
0x10c1   :  { %1403 = vrot.lane.b32.xlu1 %v1637_v17, %s1671_s13 }
0x1133   :  { %v1404_v49 = vpop.permute.xlu1 %1403 }
0x1134   :  { %1407 = vst.msk [vmem:[#allocation2 - $0x3] sm:$0x8] %vm1406_vm13, %v1404_v49 }
0x1135   :  { %1649 = shalt.err (!%p1646_p4)
}
0x1136   :  { %s1650_s27 = scalar_lea.hbm %s1960_s14, 16 }
0x1137   :  { %p1651_p5 = scmp.ne.s32.totalorder %s1960_s14, %s1650_s27  ;;  %p1654_p6 = scmp.lt.u32.totalorder %s1650_s27, %s1960_s14 }
0x1139   :  { %p1656_p7 = pnand %p1654_p6, %p1651_p5 }
0x113b   :  { %1659 = shalt.err (!%p1656_p7)
}
0x113c   :  { %1417 = dma.vmem_to_hbm [thread:$0]  %s1415_s23, 16, %s1960_s14, [#allocation3]  }
0x113d   :  { %1660 = dma.done.wait [#allocation3], 16  }
0x113e   :  { %1661 = vsyncadd [#allocation3], 4294967280 }
0x113f   :  { %1421 = vsyncpa [#allocation3], 1 }

</bundles_post_ra>
